<compile_context>
chip_gen: v7x
topology: tpu7x:2x2x1
jax: 0.10.0
libtpu: 0.0.40
codegen_flags: <defaults>
</compile_context>

<pallas_src>
import jax
import jax.numpy as jnp
from jax import lax
from jax.experimental import pallas as pl
from jax.experimental.pallas import tpu as pltpu


# ---------------------------------------------------------------------------
# XPOS cos/sin tables (mirrors the PyTorch XPOS.forward math).
# Returns un-duplicated (cos * scale, sin * scale), each [length, c//2], f32.
# ---------------------------------------------------------------------------
def xpos_cos_sin(c, length, offset=0, scale_base=512, downscale=False):
    half = c // 2
    scale_vec = (jnp.arange(0, c, 2, dtype=jnp.float32) + 0.4 * c) / (1.4 * c)
    min_pos = -(length + offset) // 2            # python floor division (as in torch)
    max_pos = length + offset + min_pos
    power = jnp.arange(min_pos, max_pos, dtype=jnp.float32) / scale_base
    scale = scale_vec[None, :] ** power[:, None]                       # [L+off, half]

    seq_len = length + offset
    inv_freq = 1.0 / (10000.0 ** (jnp.arange(0, half, dtype=jnp.float32) / half))
    sinusoid = jnp.arange(seq_len, dtype=jnp.float32)[:, None] * inv_freq[None, :]
    sin = jnp.sin(sinusoid)
    cos = jnp.cos(sinusoid)

    if seq_len > length:     # offset > 0: keep the last `length` positions
        scale = scale[-length:]
        sin = sin[-length:]
        cos = cos[-length:]
    if downscale:
        scale = 1.0 / scale
    return cos * scale, sin * scale


# ---------------------------------------------------------------------------
# Map construction, cached across calls (never rebuilt per call).
# ---------------------------------------------------------------------------
_MAP_CACHE = {}


def _get_maps(H, W, C2, offset_x, offset_y, downscale, scale_base):
    key = (H, W, C2, int(offset_x), int(offset_y), bool(downscale), int(scale_base))
    hit = _MAP_CACHE.get(key)
    if hit is not None:
        return hit

    D = C2 // 2
    cos_x, sin_x = xpos_cos_sin(D, W, offset_x, scale_base, downscale)  # [W, D/2]
    cos_y, sin_y = xpos_cos_sin(D, H, offset_y, scale_base, downscale)  # [H, D/2]
    cos_x_d = jnp.repeat(cos_x, 2, axis=1)   # duplicate_interleave -> [W, D]
    sin_x_d = jnp.repeat(sin_x, 2, axis=1)
    cos_y_d = jnp.repeat(cos_y, 2, axis=1)   # [H, D]
    sin_y_d = jnp.repeat(sin_y, 2, axis=1)

    # Full broadcast maps (H, W, 2D): first D channels <- x-dir, last D <- y-dir.
    cos_map = jnp.concatenate(
        [jnp.broadcast_to(cos_x_d[None, :, :], (H, W, D)),
         jnp.broadcast_to(cos_y_d[:, None, :], (H, W, D))], axis=-1)
    sin_map = jnp.concatenate(
        [jnp.broadcast_to(sin_x_d[None, :, :], (H, W, D)),
         jnp.broadcast_to(sin_y_d[:, None, :], (H, W, D))], axis=-1)

    # rotate_every_two folded into one SIGNED sin map:
    #   even channel p : out += x[p+1] * (-sin[p])
    #   odd  channel p : out += x[p-1] * (+sin[p])
    sign = jnp.where((jnp.arange(C2) % 2) == 0, -1.0, 1.0).astype(jnp.float32)
    cos_map = cos_map.reshape(H, W * C2).astype(jnp.float32)
    sin_map = (sin_map * sign).reshape(H, W * C2).astype(jnp.float32)

    cos_map = jax.block_until_ready(cos_map)
    sin_map = jax.block_until_ready(sin_map)
    _MAP_CACHE[key] = (cos_map, sin_map)
    return cos_map, sin_map


# ---------------------------------------------------------------------------
# Pallas kernel: out = x*cos + (x[p^1]) * sin_signed
# Partner x[p^1] is selected from the two circular lane rolls via a parity mask
# built from the ABSOLUTE lane index (so the circular wrap never leaks in:
# lane 0 is even -> uses x_up, lane L-1 is odd -> uses x_dn).
# ---------------------------------------------------------------------------
def _xpos2d_kernel(x_ref, cos_ref, sin_ref, o_ref):
    cos = cos_ref[...]                          # (TH, L) f32
    sin = sin_ref[...]                          # (TH, L) f32
    TH, L = cos.shape
    lane = lax.broadcasted_iota(jnp.int32, (TH, L), 1)
    even = (lane & 1) == 0

    TN = x_ref.shape[0]
    for i in range(TN):                         # static unroll over folded batch
        x = x_ref[i]                            # (TH, L) input dtype
        x_up = pltpu.roll(x, L - 1, 1)          # x_up[p] = x[p + 1]
        x_dn = pltpu.roll(x, 1, 1)              # x_dn[p] = x[p - 1]
        partner = jnp.where(even, x_up, x_dn)   # x[p ^ 1]
        o_ref[i] = (x * cos + partner * sin).astype(o_ref.dtype)


# ---------------------------------------------------------------------------
# Tiling / VMEM-budget helpers.
# ---------------------------------------------------------------------------
_MAX_BATCH_FOLD = 16   # cap on static unroll of the folded-batch loop


def _vmem_capacity_bytes():
    try:
        return int(pltpu.get_tpu_info().vmem_capacity_bytes)
    except Exception:
        return 64 << 20                          # conservative (v7x)


def _choose_tiles(N, H, L, itemsize, target_bytes, sublane):
    """Pick (TN, TH): whole-H-preferring, dtype-sublane-aware block sizing."""
    row_bytes = L * itemsize

    def best_mult_divisor(total, step):
        best = None
        t = step
        while t <= total:
            if total % t == 0 and t * row_bytes <= target_bytes:
                best = t
            t += step
        return best

    if H % sublane == 0:
        th = best_mult_divisor(H, sublane) or sublane
    elif H % 8 == 0:
        th = best_mult_divisor(H, 8) or 8
    else:
        th = H   # full-extent block; wrapper pads oversized non-multiple-of-8 H

    tn = 1
    if th == H:  # whole H fits in one block -> fold batch entries too
        for cand in range(1, min(N, _MAX_BATCH_FOLD) + 1):
            if N % cand == 0 and cand * th * row_bytes <= target_bytes:
                tn = cand
    return tn, th


# ---------------------------------------------------------------------------
# Wrapper: XPOS2D forward.
# ---------------------------------------------------------------------------
def xpos2d(x, offset_x=0, offset_y=0, downscale=False, scale_base=512,
           donate_x=False):
    N, H, W, C2 = x.shape
    assert C2 % 4 == 0, "XPOS2D head_dim must be divisible by 4"
    dt = x.dtype
    itemsize = jnp.dtype(dt).itemsize
    L = W * C2

    cos_map, sin_map = _get_maps(H, W, C2, offset_x, offset_y, downscale, scale_base)

    x_flat = x.reshape(N, H, L)                  # metadata-only reshape

    # Lane-dense trailing dim: pad L to a multiple of 128 (unmasked stores).
    Lp = L if L % 128 == 0 else L + ((-L) % 128)
    if Lp != L:
        x_flat = jnp.pad(x_flat, ((0, 0), (0, 0), (0, Lp - L)))
        cos_map = jnp.pad(cos_map, ((0, 0), (0, Lp - L)))
        sin_map = jnp.pad(sin_map, ((0, 0), (0, Lp - L)))

    # Generation-aware block target: bigger blocks on 128 MiB parts (v5e/v6e),
    # conservative on v7x's 64 MiB VMEM.
    vmem_cap = _vmem_capacity_bytes()
    target_bytes = (8 << 20) if vmem_cap >= (100 << 20) else (4 << 20)
    sublane = {4: 8, 2: 16, 1: 32}.get(itemsize, 8)

    # Guard: a full-H block for awkward (non multiple-of-8) large H would blow
    # the VMEM budget -> pad H to a multiple of 8 so it can be tiled.
    Hp = H
    if H % 8 != 0 and H * Lp * itemsize > target_bytes:
        Hp = H + ((-H) % 8)
        x_flat = jnp.pad(x_flat, ((0, 0), (0, Hp - H), (0, 0)))
        cos_map = jnp.pad(cos_map, ((0, Hp - H), (0, 0)))
        sin_map = jnp.pad(sin_map, ((0, Hp - H), (0, 0)))

    TN, TH = _choose_tiles(N, Hp, Lp, itemsize, target_bytes, sublane)
    grid = (Hp // TH, N // TN)                   # batch innermost -> map DMA reused

    # VMEM budget from the actual block sizes: (x in + out) + (cos + sin maps),
    # each double-buffered, plus slack.
    x_block_bytes = TN * TH * Lp * itemsize
    map_block_bytes = TH * Lp * 4
    vmem_needed = 4 * x_block_bytes + 4 * map_block_bytes + (2 << 20)
    vmem_limit = int(min(vmem_cap, max(32 << 20, vmem_needed)))

    x_spec = pl.BlockSpec((TN, TH, Lp), lambda h, n: (n, h, 0))
    map_spec = pl.BlockSpec((TH, Lp), lambda h, n: (h, 0))

    out_flat = pl.pallas_call(
        _xpos2d_kernel,
        grid=grid,
        in_specs=[x_spec, map_spec, map_spec],
        out_specs=pl.BlockSpec((TN, TH, Lp), lambda h, n: (n, h, 0)),
        out_shape=jax.ShapeDtypeStruct((N, Hp, Lp), dt),
        input_output_aliases={0: 0} if donate_x else {},
        compiler_params=pltpu.CompilerParams(
            dimension_semantics=("parallel", "parallel"),
            vmem_limit_bytes=vmem_limit,
        ),
    )(x_flat, cos_map, sin_map)

    if Hp != H or Lp != L:
        out_flat = out_flat[:, :H, :L]
    return out_flat.reshape(N, H, W, C2)


# ---------------------------------------------------------------------------
# Pure-JAX reference (direct transliteration of the torch module) for checking.
# ---------------------------------------------------------------------------
def xpos2d_ref(x, offset_x=0, offset_y=0, downscale=False, scale_base=512):
    N, H, W, C2 = x.shape
    C = C2 // 2

    def xpos(v, offset):
        B, Lp, Dd = v.shape
        cos_s, sin_s = xpos_cos_sin(Dd, Lp, offset, scale_base, downscale)
        cos_d = jnp.repeat(cos_s, 2, axis=1)    # duplicate_interleave
        sin_d = jnp.repeat(sin_s, 2, axis=1)
        x1 = v[:, :, 0::2]
        x2 = v[:, :, 1::2]
        rot = jnp.stack([-x2, x1], axis=-1).reshape(B, Lp, Dd)   # rotate_every_two
        return v * cos_d + rot * sin_d

    dir_x = x[..., :C].reshape(N * H, W, C)
    dir_y = jnp.transpose(x[..., C:], (0, 2, 1, 3)).reshape(N * W, H, C)
    dx = xpos(dir_x, offset_x).reshape(N, H, W, C)
    dy = xpos(dir_y, offset_y).reshape(N, W, H, C).transpose(0, 2, 1, 3)
    return jnp.concatenate([dx, dy], axis=-1)


if __name__ == "__main__":
    key = jax.random.PRNGKey(0)
    N, H, W, head_dim = 2, 8, 16, 64          # XPOS2D head_dim -> inner XPOS uses 32
    x = jax.random.normal(key, (N, H, W, head_dim), dtype=jnp.float32)

    # zero-offset case
    out = xpos2d(x, offset_x=0, offset_y=0, downscale=False)
    out = jax.block_until_ready(out)
    ref = xpos2d_ref(x)
    assert out.shape == x.shape
    assert jnp.allclose(out, ref, atol=1e-5, rtol=1e-5), "mismatch vs reference"

    # offset / downscale case
    out2 = jax.block_until_ready(xpos2d(x, offset_x=2, offset_y=1, downscale=True))
    ref2 = xpos2d_ref(x, offset_x=2, offset_y=1, downscale=True)
    assert jnp.allclose(out2, ref2, atol=1e-5, rtol=1e-5), "mismatch vs reference (offset)"

    print("KERNEL_OK")
</pallas_src>

<mosaic_0001>
module attributes {stable_mosaic.version = 11 : i64} {
  func.func @_xpos2d_kernel(%arg0: i32, %arg1: i32, %arg2: memref<2x8x1024xf32, #tpu.memory_space<vmem>>, %arg3: memref<8x1024xf32, #tpu.memory_space<vmem>>, %arg4: memref<8x1024xf32, #tpu.memory_space<vmem>>, %arg5: memref<2x8x1024xf32, #tpu.memory_space<vmem>>) attributes {dimension_semantics = [#tpu.dimension_semantics<parallel>, #tpu.dimension_semantics<parallel>], iteration_bounds = array<i64: 1, 1>, scalar_prefetch = 0 : i64, scratch_operands = 0 : i64, tpu.core_type = #tpu.core_type<tc>, window_params = [{transform_indices = @transform_0, window_bounds = array<i64: 2, 8, 1024>}, {transform_indices = @transform_1, window_bounds = array<i64: 8, 1024>}, {transform_indices = @transform_2, window_bounds = array<i64: 8, 1024>}, {transform_indices = @transform_3, window_bounds = array<i64: 2, 8, 1024>}]} {
    %c0 = arith.constant 0 : index
    %c0_0 = arith.constant 0 : index
    %0 = vector.load %arg3[%c0, %c0_0] : memref<8x1024xf32, #tpu.memory_space<vmem>>, vector<8x1024xf32>
    %c0_1 = arith.constant 0 : index
    %c0_2 = arith.constant 0 : index
    %1 = vector.load %arg4[%c0_1, %c0_2] : memref<8x1024xf32, #tpu.memory_space<vmem>>, vector<8x1024xf32>
    %2 = tpu.iota {dimensions = array<i32: 1>} : vector<8x1024xi32>
    %c1_i32 = arith.constant 1 : i32
    %3 = vector.broadcast %c1_i32 : i32 to vector<8x1024xi32>
    %4 = arith.andi %2, %3 : vector<8x1024xi32>
    %c0_i32 = arith.constant 0 : i32
    %5 = vector.broadcast %c0_i32 : i32 to vector<8x1024xi32>
    %6 = arith.cmpi eq, %4, %5 : vector<8x1024xi32>
    %c0_3 = arith.constant 0 : index
    %c0_4 = arith.constant 0 : index
    %c0_5 = arith.constant 0 : index
    %7 = vector.load %arg2[%c0_3, %c0_4, %c0_5] : memref<2x8x1024xf32, #tpu.memory_space<vmem>>, vector<1x8x1024xf32>
    %8 = vector.shape_cast %7 : vector<1x8x1024xf32> to vector<8x1024xf32>
    %c1023_i32 = arith.constant 1023 : i32
    %9 = tpu.dynamic_rotate %8 by %c1023_i32 dim 1 : vector<8x1024xf32>, i32 -> vector<8x1024xf32>
    %c1_i32_6 = arith.constant 1 : i32
    %10 = tpu.dynamic_rotate %8 by %c1_i32_6 dim 1 : vector<8x1024xf32>, i32 -> vector<8x1024xf32>
    %11 = arith.select %6, %9, %10 : vector<8x1024xi1>, vector<8x1024xf32>
    %12 = arith.mulf %8, %0 : vector<8x1024xf32>
    %13 = arith.mulf %11, %1 : vector<8x1024xf32>
    %14 = arith.addf %12, %13 : vector<8x1024xf32>
    %c0_7 = arith.constant 0 : index
    %c0_8 = arith.constant 0 : index
    %c0_9 = arith.constant 0 : index
    %15 = vector.load %arg5[%c0_7, %c0_8, %c0_9] : memref<2x8x1024xf32, #tpu.memory_space<vmem>>, vector<1x8x1024xf32>
    %16 = vector.shape_cast %15 : vector<1x8x1024xf32> to vector<8x1024xf32>
    %17 = vector.shape_cast %14 : vector<8x1024xf32> to vector<1x8x1024xf32>
    tpu.vector_store %arg5[%c0_7, %c0_8, %c0_9], %17 {strides = array<i32>} : memref<2x8x1024xf32, #tpu.memory_space<vmem>>, vector<1x8x1024xf32>,
    %c1 = arith.constant 1 : index
    %c0_10 = arith.constant 0 : index
    %c0_11 = arith.constant 0 : index
    %18 = vector.load %arg2[%c1, %c0_10, %c0_11] : memref<2x8x1024xf32, #tpu.memory_space<vmem>>, vector<1x8x1024xf32>
    %19 = vector.shape_cast %18 : vector<1x8x1024xf32> to vector<8x1024xf32>
    %c1023_i32_12 = arith.constant 1023 : i32
    %20 = tpu.dynamic_rotate %19 by %c1023_i32_12 dim 1 : vector<8x1024xf32>, i32 -> vector<8x1024xf32>
    %c1_i32_13 = arith.constant 1 : i32
    %21 = tpu.dynamic_rotate %19 by %c1_i32_13 dim 1 : vector<8x1024xf32>, i32 -> vector<8x1024xf32>
    %22 = arith.select %6, %20, %21 : vector<8x1024xi1>, vector<8x1024xf32>
    %23 = arith.mulf %19, %0 : vector<8x1024xf32>
    %24 = arith.mulf %22, %1 : vector<8x1024xf32>
    %25 = arith.addf %23, %24 : vector<8x1024xf32>
    %c1_14 = arith.constant 1 : index
    %c0_15 = arith.constant 0 : index
    %c0_16 = arith.constant 0 : index
    %26 = vector.load %arg5[%c1_14, %c0_15, %c0_16] : memref<2x8x1024xf32, #tpu.memory_space<vmem>>, vector<1x8x1024xf32>
    %27 = vector.shape_cast %26 : vector<1x8x1024xf32> to vector<8x1024xf32>
    %28 = vector.shape_cast %25 : vector<8x1024xf32> to vector<1x8x1024xf32>
    tpu.vector_store %arg5[%c1_14, %c0_15, %c0_16], %28 {strides = array<i32>} : memref<2x8x1024xf32, #tpu.memory_space<vmem>>, vector<1x8x1024xf32>,
    return
  }
  func.func @transform_0(%arg0: i32, %arg1: i32) -> (i32, i32, i32) {
    %c0_i32 = arith.constant 0 : i32
    %c0_i32_0 = arith.constant 0 : i32
    return %arg1, %arg0, %c0_i32 : i32, i32, i32
  }
  func.func @transform_1(%arg0: i32, %arg1: i32) -> (i32, i32) {
    %c0_i32 = arith.constant 0 : i32
    %c0_i32_0 = arith.constant 0 : i32
    return %arg0, %c0_i32 : i32, i32
  }
  func.func @transform_2(%arg0: i32, %arg1: i32) -> (i32, i32) {
    %c0_i32 = arith.constant 0 : i32
    %c0_i32_0 = arith.constant 0 : i32
    return %arg0, %c0_i32 : i32, i32
  }
  func.func @transform_3(%arg0: i32, %arg1: i32) -> (i32, i32, i32) {
    %c0_i32 = arith.constant 0 : i32
    %c0_i32_0 = arith.constant 0 : i32
    return %arg1, %arg0, %c0_i32 : i32, i32, i32
  }
}

</mosaic_0001>

<bundles_post_ra>
// kernel: tpu_custom_call.1
= control target key start
LH: loop header
LB: loop body
LE: loop exit
PB: predicated region body
PF: predicated region fallthrough
CT: control target
= control target key end

     0   :  { %8 = vsyncpa [#allocation3], 0  ;;  %s834_s0 = inlined_call_operand.hbm [shape: f32[2,8,1024], index: 0, kind: input, shape index: {}]   ;;  %s835_s1 = inlined_call_operand.hbm [shape: f32[8,1024], index: 1, kind: input, shape index: {}]   ;;  %s836_s2 = inlined_call_operand.hbm [shape: f32[8,1024], index: 2, kind: input, shape index: {}]   ;;  %s837_s3 = inlined_call_operand.hbm [shape: f32[2,8,1024], index: 3, kind: output, shape index: {}]  }
   0x1   :  { %9 = vsyncpa [#allocation6], 0 }
   0x2   :  { %10 = vsyncpa [#allocation4], 0  ;;  %s409_s12 = smov [#allocation5]   ;;  %s410_s14 = smov [#allocation2]  }
   0x3   :  { %s29_s13 = sshll.u32 %s409_s12, 4  ;;  %s16_s15 = sshll.u32 %s410_s14, 4  ;;  %s30_s13 = int_to_ptr.vmem [resolvable:$true] %s29_s13  ;;  %s437_s15 = int_to_ptr.vmem [resolvable:$true] %s16_s15 }
   0x4   :  { %s315_s18 = scalar_lea.hbm %s835_s1, 1024 }
   0x5   :  { %p316_p0 = scmp.ne.s32.totalorder %s835_s1, %s315_s18  ;;  %p319_p1 = scmp.lt.u32.totalorder %s315_s18, %s835_s1 }
   0x7   :  { %p321_p2 = pnand %p319_p1, %p316_p0 }
   0x9   :  { %324 = shalt.err (!%p321_p2)
}
   0xa   :  { %s325_s23 = scalar_lea.vmem %s30_s13, 1024  ;;  %p330_p4 = scmp.lt.s32.totalorder %s30_s13, %s30_s13 }
   0xb   :  { %p326_p3 = scmp.ne.s32.totalorder %s30_s13, %s325_s23  ;;  %p331_p5 = scmp.lt.s32.totalorder %s325_s23, %s325_s23 }
   0xd   :  { %p332_p6 = por %p331_p5, %p330_p4 }
   0xf   :  { %p333_p7 = pnand %p332_p6, %p326_p3 }
  0x11   :  { %336 = shalt.err (!%p333_p7)
}
  0x12   :  { %32 = dma.hbm_to_vmem [thread:$0]  %s835_s1, 1024, %s30_s13, [#allocation6]  }
  0x13   :  { %s337_s28 = scalar_lea.hbm %s834_s0, 2048 }
  0x14   :  { %p338_p8 = scmp.ne.s32.totalorder %s834_s0, %s337_s28  ;;  %p341_p9 = scmp.lt.u32.totalorder %s337_s28, %s834_s0 }
  0x16   :  { %p343_p10 = pnand %p341_p9, %p338_p8 }
  0x18   :  { %346 = shalt.err (!%p343_p10)
}
  0x19   :  { %s347_s6 = scalar_lea.vmem %s437_s15, 2048  ;;  %p352_p12 = scmp.lt.s32.totalorder %s437_s15, %s437_s15 }
  0x1a   :  { %p348_p11 = scmp.ne.s32.totalorder %s437_s15, %s347_s6  ;;  %p353_p13 = scmp.lt.s32.totalorder %s347_s6, %s347_s6 }
  0x1c   :  { %p354_p0 = por %p353_p13, %p352_p12 }
  0x1e   :  { %p355_p1 = pnand %p354_p0, %p348_p11 }
  0x20   :  { %358 = shalt.err (!%p355_p1)
}
  0x21   :  { %s411_s1 = smov 1024   ;;  %s412_s7 = smov 64  }
  0x22   :  { %22 = dma.hbm_to_vmem [thread:$0]  %s834_s0, 2048, %s437_s15, [#allocation3], %s411_s1, %s411_s1, %s412_s7  }
  0x23   :  { %s413_s10 = smov [#allocation7]   ;;  %s359_s14 = scalar_lea.hbm %s836_s2, 1024 }
  0x24   :  { %s39_s11 = sshll.u32 %s413_s10, 4  ;;  %p360_p2 = scmp.ne.s32.totalorder %s836_s2, %s359_s14  ;;  %s40_s11 = int_to_ptr.vmem [resolvable:$true] %s39_s11 }
  0x25   :  { %p363_p3 = scmp.lt.u32.totalorder %s359_s14, %s836_s2 }
  0x27   :  { %p365_p4 = pnand %p363_p3, %p360_p2 }
  0x29   :  { %368 = shalt.err (!%p365_p4)
}
  0x2a   :  { %s369_s20 = scalar_lea.vmem %s40_s11, 1024  ;;  %p374_p6 = scmp.lt.s32.totalorder %s40_s11, %s40_s11 }
  0x2b   :  { %p370_p5 = scmp.ne.s32.totalorder %s40_s11, %s369_s20  ;;  %p375_p7 = scmp.lt.s32.totalorder %s369_s20, %s369_s20 }
  0x2d   :  { %p376_p8 = por %p375_p7, %p374_p6 }
  0x2f   :  { %p377_p9 = pnand %p376_p8, %p370_p5 }
  0x31   :  { %380 = shalt.err (!%p377_p9)
}
  0x32   :  { %42 = dma.hbm_to_vmem [thread:$0]  %s836_s2, 1024, %s40_s11, [#allocation6]  }
  0x33   :  { %403 = dma.done.wait [#allocation3], 2048  }
  0x34   :  { %404 = vsyncadd [#allocation3], 4294965248 }
  0x35   :  { %405 = dma.done.wait [#allocation6], 2048  }
  0x36   :  { %406 = vsyncadd [#allocation6], 4294965248  ;;  %v483_v0 = vld [vmem:[#allocation2 + $0x10] sm:$0xff]  ;;  %v485_v1 = vld [vmem:[#allocation2] sm:$0xff]  ;;  %s414_s21 = smov 127   ;;  %s415_s2 = smov 1   ;;  %v68_v18 = vlaneseq }
  0x37   :  { %105 = vrot.lane.b32.xlu1 %v483_v0, %s414_s21  ;;  %101 = vrot.lane.b32.xlu0 %v485_v1, %s414_s21  ;;  %v491_v2 = vld [vmem:[#allocation2 + $0x18] sm:$0xff]  ;;  %v493_v3 = vld [vmem:[#allocation2 + $0x8] sm:$0xff]  ;;  %v501_v5 = vld [vmem:[#allocation2 + $0x20] sm:$0xff]  ;;  %s416_s22 = smov [#allocation8]  }
  0x38   :  { %v499_v4 = vld [vmem:[#allocation2 + $0x28] sm:$0xff]  ;;  %v507_v6 = vld [vmem:[#allocation2 + $0x38] sm:$0xff]  ;;  %v509_v7 = vld [vmem:[#allocation2 + $0x30] sm:$0xff]  ;;  %v583_v21 = vand.u32 127, %v68_v18  ;;  %s294_s23 = sshll.u32 %s416_s22, 4  ;;  %s295_s23 = int_to_ptr.vmem [resolvable:$true] %s294_s23 }
  0x39   :  { %v531_v8 = vld [vmem:[#allocation2 + $0x48] sm:$0xff]  ;;  %v533_v9 = vld [vmem:[#allocation2 + $0x40] sm:$0xff]  ;;  %v539_v10 = vld [vmem:[#allocation2 + $0x58] sm:$0xff]  ;;  %s381_s24 = scalar_lea.vmem %s295_s23, 2048  ;;  %p386_p11 = scmp.lt.s32.totalorder %s295_s23, %s295_s23 }
  0x3a   :  { %v541_v11 = vld [vmem:[#allocation2 + $0x50] sm:$0xff]  ;;  %v547_v12 = vld [vmem:[#allocation2 + $0x68] sm:$0xff]  ;;  %v549_v13 = vld [vmem:[#allocation2 + $0x60] sm:$0xff]  ;;  %v70_v22 = vadd.s32 128, %v583_v21  ;;  %v71_v26 = vadd.s32 256, %v583_v21  ;;  %v72_v27 = vadd.s32 384, %v583_v21  ;;  %p382_p10 = scmp.ne.s32.totalorder %s295_s23, %s381_s24  ;;  %p387_p12 = scmp.lt.s32.totalorder %s381_s24, %s381_s24 }
  0x3b   :  { %107 = vrot.lane.b32.xlu1 %v491_v2, %s414_s21  ;;  %103 = vrot.lane.b32.xlu0 %v493_v3, %s414_s21  ;;  %v555_v14 = vld [vmem:[#allocation2 + $0x78] sm:$0xff]  ;;  %v557_v15 = vld [vmem:[#allocation2 + $0x70] sm:$0xff]  ;;  %v592_v30 = vld [vmem:[#allocation5 + $0x8] sm:$0xff]  ;;  %vm117_vm0 = vcmp.lt.s32.totalorder %v583_v21, 127  ;;  %vm142_vm1 = vcmp.lt.s32.totalorder %v583_v21, 1  ;;  %v73_v31 = vadd.s32 512, %v583_v21 }
  0x3c   :  { %v78_v25 = vand.u32 1, %v70_v22  ;;  %v74_v32 = vadd.s32 640, %v583_v21  ;;  %v598_v33 = vld [vmem:[#allocation5 + $0x10] sm:$0xff]  ;;  %v79_v35 = vand.u32 1, %v71_v26  ;;  %v80_v36 = vand.u32 1, %v72_v27  ;;  %v606_v39 = vld [vmem:[#allocation7 + $0x8] sm:$0xff]  ;;  %p388_p13 = por %p387_p12, %p386_p11 }
  0x3d   :  { %v608_v40 = vld [vmem:[#allocation5 + $0x18] sm:$0xff]  ;;  %v160_v41 = vmul.f32 %v493_v3, %v592_v30  ;;  %v612_v42 = vld [vmem:[#allocation5 + $0x28] sm:$0xff]  ;;  %v161_v45 = vmul.f32 %v483_v0, %v598_v33  ;;  %v81_v47 = vand.u32 1, %v73_v31  ;;  %v76_v52 = vadd.s32 896, %v583_v21  ;;  %v640_v58 = vld [vmem:[#allocation7 + $0x10] sm:$0xff] }
  0x3e   :  { %vm600_vm2 = vcmp.eq.s32.totalorder %v78_v25, 0  ;;  %v82_v48 = vand.u32 1, %v74_v32  ;;  %vm625_vm3 = vcmp.eq.s32.totalorder %v79_v35, 0  ;;  %vm629_vm4 = vcmp.eq.s32.totalorder %v80_v36, 0  ;;  %v642_v59 = vld [vmem:[#allocation7 + $0x18] sm:$0xff]  ;;  %v645_v61 = vld [vmem:[#allocation5 + $0x20] sm:$0xff]  ;;  %p389_p0 = pnand %p388_p13, %p382_p10 }
  0x3f   :  { %111 = vrot.lane.b32.xlu1 %v499_v4, %s414_s21  ;;  %109 = vrot.lane.b32.xlu0 %v501_v5, %s414_s21  ;;  %v162_v53 = vmul.f32 %v491_v2, %v608_v40  ;;  %v164_v54 = vmul.f32 %v499_v4, %v612_v42  ;;  %v75_v60 = vadd.s32 768, %v583_v21  ;;  %vm657_vm5 = vcmp.eq.s32.totalorder %v81_v47, 0  ;;  %v667_v22 = vld [vmem:[#allocation5 + $0x38] sm:$0xff]  ;;  %v683_v47 = vld [vmem:[#allocation5 + $0x30] sm:$0xff] }
  0x40   :  { %vm661_vm6 = vcmp.eq.s32.totalorder %v82_v48, 0  ;;  %v77_v27 = vand.u32 1, %v583_v21  ;;  %v84_v31 = vand.u32 1, %v76_v52  ;;  %v163_v32 = vmul.f32 %v501_v5, %v645_v61 }
  0x41   :  { %v166_v52 = vmul.f32 %v507_v6, %v667_v22 }
  0x42   :  { %vm699_vm7 = vcmp.eq.s32.totalorder %v77_v27, 0  ;;  %vm703_vm8 = vcmp.eq.s32.totalorder %v84_v31, 0 }
  0x43   :  { %115 = vrot.lane.b32.xlu1 %v507_v6, %s414_s21  ;;  %113 = vrot.lane.b32.xlu0 %v509_v7, %s414_s21 }
  0x47   :  { %128 = vrot.lane.b32.xlu1 %v493_v3, %s415_s2  ;;  %126 = vrot.lane.b32.xlu0 %v485_v1, %s415_s2 }
  0x4b   :  { %132 = vrot.lane.b32.xlu1 %v491_v2, %s415_s2  ;;  %130 = vrot.lane.b32.xlu0 %v483_v0, %s415_s2 }
  0x4f   :  { %136 = vrot.lane.b32.xlu1 %v499_v4, %s415_s2  ;;  %134 = vrot.lane.b32.xlu0 %v501_v5, %s415_s2 }
  0x53   :  { %140 = vrot.lane.b32.xlu1 %v507_v6, %s415_s2  ;;  %138 = vrot.lane.b32.xlu0 %v509_v7, %s415_s2  ;;  %v165_v6 = vmul.f32 %v509_v7, %v683_v47 }
  0x57   :  { %202 = vrot.lane.b32.xlu1 %v531_v8, %s414_s21  ;;  %200 = vrot.lane.b32.xlu0 %v533_v9, %s414_s21 }
  0x5b   :  { %206 = vrot.lane.b32.xlu1 %v539_v10, %s414_s21  ;;  %204 = vrot.lane.b32.xlu0 %v541_v11, %s414_s21 }
  0x5f   :  { %210 = vrot.lane.b32.xlu1 %v547_v12, %s414_s21  ;;  %208 = vrot.lane.b32.xlu0 %v549_v13, %s414_s21 }
  0x63   :  { %214 = vrot.lane.b32.xlu1 %v555_v14, %s414_s21  ;;  %212 = vrot.lane.b32.xlu0 %v557_v15, %s414_s21 }
  0x67   :  { %226 = vrot.lane.b32.xlu1 %v531_v8, %s415_s2  ;;  %224 = vrot.lane.b32.xlu0 %v533_v9, %s415_s2 }
  0x6b   :  { %230 = vrot.lane.b32.xlu1 %v539_v10, %s415_s2  ;;  %228 = vrot.lane.b32.xlu0 %v541_v11, %s415_s2 }
  0x6f   :  { %234 = vrot.lane.b32.xlu1 %v547_v12, %s415_s2  ;;  %232 = vrot.lane.b32.xlu0 %v549_v13, %s415_s2 }
  0x73   :  { %238 = vrot.lane.b32.xlu1 %v555_v14, %s415_s2  ;;  %236 = vrot.lane.b32.xlu0 %v557_v15, %s415_s2 }
  0xa9   :  { %v106_v16 = vpop.permute.xlu1 %105  ;;  %v579_v17 = vpop.permute.xlu0 %101 }
  0xad   :  { %v108_v19 = vpop.permute.xlu1 %107  ;;  %v581_v20 = vpop.permute.xlu0 %103 }
  0xae   :  { %v123_v43 = vsel %vm117_vm0, %v581_v20, %v106_v16  ;;  %v122_v55 = vsel %vm117_vm0, %v106_v16, %v108_v19 }
  0xb1   :  { %v112_v23 = vpop.permute.xlu1 %111  ;;  %v110_v24 = vpop.permute.xlu0 %109 }
  0xb2   :  { %v121_v62 = vsel %vm117_vm0, %v108_v19, %v110_v24  ;;  %v665_v19 = vld [vmem:[#allocation5] sm:$0xff]  ;;  %v120_v35 = vsel %vm117_vm0, %v110_v24, %v112_v23 }
  0xb5   :  { %v588_v28 = vpop.permute.xlu1 %115  ;;  %v590_v29 = vpop.permute.xlu0 %113 }
  0xb6   :  { %v119_v36 = vsel %vm117_vm0, %v112_v23, %v590_v29  ;;  %v159_v23 = vmul.f32 %v485_v1, %v665_v19  ;;  %v118_v27 = vsel %vm117_vm0, %v590_v29, %v588_v28 }
  0xb9   :  { %v129_v37 = vpop.permute.xlu1 %128  ;;  %v604_v38 = vpop.permute.xlu0 %126 }
  0xba   :  { %v149_v44 = vsel %vm142_vm1, %v604_v38, %v129_v37 }
  0xbb   :  { %v152_v46 = vsel %vm600_vm2, %v123_v43, %v149_v44  ;;  %v679_v43 = vld [vmem:[#allocation7 + $0x20] sm:$0xff]  ;;  %v681_v44 = vld [vmem:[#allocation7 + $0x28] sm:$0xff] }
  0xbc   :  { %v168_v49 = vmul.f32 %v152_v46, %v606_v39  ;;  %v83_v46 = vand.u32 1, %v75_v60  ;;  %v124_v60 = vsel %vm117_vm0, %v579_v17, %v581_v20 }
  0xbd   :  { %v133_v56 = vpop.permute.xlu1 %132  ;;  %v131_v57 = vpop.permute.xlu0 %130 }
  0xbe   :  { %v176_v63 = vadd.f32 %v168_v49, %v160_v41  ;;  %v147_v0 = vsel %vm142_vm1, %v131_v57, %v133_v56  ;;  %v148_v2 = vsel %vm142_vm1, %v129_v37, %v131_v57  ;;  %vm719_vm9 = vcmp.eq.s32.totalorder %v83_v46, 0 }
  0xbf   :  { %v153_v3 = vsel %vm625_vm3, %v122_v55, %v148_v2  ;;  %v154_v4 = vsel %vm629_vm4, %v121_v62, %v147_v0  ;;  %v125_v62 = vsel %vm117_vm0, %v588_v28, %v579_v17  ;;  %v717_v0 = vld [vmem:[#allocation7] sm:$0xff] }
  0xc0   :  { %184 = vst [vmem:[#allocation8 + $0x8] sm:$0xff] %v176_v63  ;;  %v169_v25 = vmul.f32 %v153_v3, %v640_v58  ;;  %v170_v26 = vmul.f32 %v154_v4, %v642_v59  ;;  %v723_v4 = vld [vmem:[#allocation7 + $0x38] sm:$0xff] }
  0xc1   :  { %v137_v37 = vpop.permute.xlu1 %136  ;;  %v135_v41 = vpop.permute.xlu0 %134 }
  0xc2   :  { %v177_v48 = vadd.f32 %v169_v25, %v161_v45  ;;  %v178_v49 = vadd.f32 %v170_v26, %v162_v53  ;;  %v145_v5 = vsel %vm142_vm1, %v135_v41, %v137_v37  ;;  %v146_v24 = vsel %vm142_vm1, %v133_v56, %v135_v41  ;;  %v728_v26 = vld [vmem:[#allocation7 + $0x30] sm:$0xff] }
  0xc3   :  { %v155_v55 = vsel %vm657_vm5, %v120_v35, %v146_v24  ;;  %v156_v57 = vsel %vm661_vm6, %v119_v36, %v145_v5 }
  0xc4   :  { %185 = vst [vmem:[#allocation8 + $0x10] sm:$0xff] %v177_v48  ;;  %186 = vst [vmem:[#allocation8 + $0x18] sm:$0xff] %v178_v49  ;;  %v171_v45 = vmul.f32 %v155_v55, %v679_v43  ;;  %v172_v53 = vmul.f32 %v156_v57, %v681_v44 }
  0xc5   :  { %v141_v63 = vpop.permute.xlu1 %140  ;;  %v139_v3 = vpop.permute.xlu0 %138 }
  0xc6   :  { %v179_v7 = vadd.f32 %v171_v45, %v163_v32  ;;  %v180_v25 = vadd.f32 %v172_v53, %v164_v54  ;;  %v150_v20 = vsel %vm142_vm1, %v141_v63, %v604_v38  ;;  %v143_v17 = vsel %vm142_vm1, %v139_v3, %v141_v63 }
  0xc7   :  { %v151_v31 = vsel %vm699_vm7, %v124_v60, %v150_v20  ;;  %v144_v54 = vsel %vm142_vm1, %v137_v37, %v139_v3  ;;  %v158_v32 = vsel %vm703_vm8, %v125_v62, %v143_v17  ;;  %v257_v62 = vmul.f32 %v531_v8, %v592_v30 }
  0xc8   :  { %187 = vst [vmem:[#allocation8 + $0x20] sm:$0xff] %v179_v7  ;;  %188 = vst [vmem:[#allocation8 + $0x28] sm:$0xff] %v180_v25  ;;  %v167_v38 = vmul.f32 %v151_v31, %v717_v0  ;;  %v157_v35 = vsel %vm719_vm9, %v118_v27, %v144_v54  ;;  %v174_v36 = vmul.f32 %v158_v32, %v723_v4 }
  0xc9   :  { %v173_v28 = vmul.f32 %v157_v35, %v728_v26  ;;  %v203_v29 = vpop.permute.xlu1 %202  ;;  %v201_v41 = vpop.permute.xlu0 %200  ;;  %v259_v3 = vmul.f32 %v539_v10, %v608_v40  ;;  %v258_v7 = vmul.f32 %v541_v11, %v598_v33  ;;  %v261_v27 = vmul.f32 %v547_v12, %v612_v42 }
  0xca   :  { %v175_v46 = vadd.f32 %v167_v38, %v159_v23  ;;  %v182_v48 = vadd.f32 %v174_v36, %v166_v52  ;;  %v260_v31 = vmul.f32 %v549_v13, %v645_v61  ;;  %v256_v42 = vmul.f32 %v533_v9, %v665_v19 }
  0xcb   :  { %v181_v49 = vadd.f32 %v173_v28, %v165_v6  ;;  %v263_v28 = vmul.f32 %v555_v14, %v667_v22  ;;  %v222_v16 = vsel %vm117_vm0, %v201_v41, %v203_v29 }
  0xcc   :  { %183 = vst [vmem:[#allocation8] sm:$0xff] %v175_v46  ;;  %190 = vst [vmem:[#allocation8 + $0x38] sm:$0xff] %v182_v48  ;;  %v262_v46 = vmul.f32 %v557_v15, %v683_v47 }
  0xcd   :  { %189 = vst [vmem:[#allocation8 + $0x30] sm:$0xff] %v181_v49  ;;  %v207_v37 = vpop.permute.xlu1 %206  ;;  %v205_v5 = vpop.permute.xlu0 %204 }
  0xce   :  { %v221_v63 = vsel %vm117_vm0, %v203_v29, %v205_v5  ;;  %v220_v8 = vsel %vm117_vm0, %v205_v5, %v207_v37 }
  0xd1   :  { %v211_v24 = vpop.permute.xlu1 %210  ;;  %v209_v55 = vpop.permute.xlu0 %208 }
  0xd2   :  { %v219_v20 = vsel %vm117_vm0, %v207_v37, %v209_v55  ;;  %v218_v54 = vsel %vm117_vm0, %v209_v55, %v211_v24 }
  0xd5   :  { %v215_v57 = vpop.permute.xlu1 %214  ;;  %v213_v45 = vpop.permute.xlu0 %212 }
  0xd6   :  { %v217_v50 = vsel %vm117_vm0, %v211_v24, %v213_v45  ;;  %v223_v18 = vsel %vm117_vm0, %v215_v57, %v201_v41  ;;  %v216_v14 = vsel %vm117_vm0, %v213_v45, %v215_v57 }
  0xd9   :  { %v227_v53 = vpop.permute.xlu1 %226  ;;  %v225_v60 = vpop.permute.xlu0 %224 }
  0xda   :  { %v246_v23 = vsel %vm142_vm1, %v225_v60, %v227_v53 }
  0xdb   :  { %v249_v52 = vsel %vm600_vm2, %v221_v63, %v246_v23 }
  0xdc   :  { %v265_v6 = vmul.f32 %v249_v52, %v606_v39 }
  0xdd   :  { %v231_v30 = vpop.permute.xlu1 %230  ;;  %v229_v25 = vpop.permute.xlu0 %228 }
  0xde   :  { %v273_v17 = vadd.f32 %v265_v6, %v257_v62  ;;  %v244_v34 = vsel %vm142_vm1, %v229_v25, %v231_v30  ;;  %v245_v39 = vsel %vm142_vm1, %v227_v53, %v229_v25 }
  0xdf   :  { %v250_v10 = vsel %vm625_vm3, %v220_v8, %v245_v39  ;;  %v251_v11 = vsel %vm629_vm4, %v219_v20, %v244_v34 }
  0xe0   :  { %282 = vst [vmem:[#allocation8 + $0x48] sm:$0xff] %v273_v17  ;;  %v266_v33 = vmul.f32 %v250_v10, %v640_v58  ;;  %v267_v40 = vmul.f32 %v251_v11, %v642_v59 }
  0xe1   :  { %v235_v32 = vpop.permute.xlu1 %234  ;;  %v233_v51 = vpop.permute.xlu0 %232 }
  0xe2   :  { %v274_v38 = vadd.f32 %v266_v33, %v258_v7  ;;  %v275_v35 = vadd.f32 %v267_v40, %v259_v3  ;;  %v242_v58 = vsel %vm142_vm1, %v233_v51, %v235_v32  ;;  %v243_v59 = vsel %vm142_vm1, %v231_v30, %v233_v51 }
  0xe3   :  { %v252_v12 = vsel %vm657_vm5, %v218_v54, %v243_v59  ;;  %v253_v13 = vsel %vm661_vm6, %v217_v50, %v242_v58 }
  0xe4   :  { %283 = vst [vmem:[#allocation8 + $0x50] sm:$0xff] %v274_v38  ;;  %284 = vst [vmem:[#allocation8 + $0x58] sm:$0xff] %v275_v35  ;;  %v268_v61 = vmul.f32 %v252_v12, %v679_v43  ;;  %v269_v36 = vmul.f32 %v253_v13, %v681_v44 }
  0xe5   :  { %v239_v48 = vpop.permute.xlu1 %238  ;;  %v237_v9 = vpop.permute.xlu0 %236 }
  0xe6   :  { %v276_v19 = vadd.f32 %v268_v61, %v260_v31  ;;  %v277_v49 = vadd.f32 %v269_v36, %v261_v27  ;;  %v247_v43 = vsel %vm142_vm1, %v239_v48, %v225_v60  ;;  %v240_v44 = vsel %vm142_vm1, %v237_v9, %v239_v48 }
  0xe7   :  { %v248_v15 = vsel %vm699_vm7, %v222_v16, %v247_v43  ;;  %v241_v22 = vsel %vm142_vm1, %v235_v32, %v237_v9  ;;  %v255_v47 = vsel %vm703_vm8, %v223_v18, %v240_v44 }
  0xe8   :  { %285 = vst [vmem:[#allocation8 + $0x60] sm:$0xff] %v276_v19  ;;  %286 = vst [vmem:[#allocation8 + $0x68] sm:$0xff] %v277_v49  ;;  %v264_v29 = vmul.f32 %v248_v15, %v717_v0  ;;  %v254_v41 = vsel %vm719_vm9, %v216_v14, %v241_v22  ;;  %v271_v37 = vmul.f32 %v255_v47, %v723_v4 }
  0xe9   :  { %v270_v56 = vmul.f32 %v254_v41, %v728_v26 }
  0xea   :  { %v272_v5 = vadd.f32 %v264_v29, %v256_v42  ;;  %v279_v24 = vadd.f32 %v271_v37, %v263_v28 }
  0xeb   :  { %v278_v21 = vadd.f32 %v270_v56, %v262_v46 }
  0xec   :  { %281 = vst [vmem:[#allocation8 + $0x40] sm:$0xff] %v272_v5  ;;  %288 = vst [vmem:[#allocation8 + $0x78] sm:$0xff] %v279_v24 }
  0xed   :  { %287 = vst [vmem:[#allocation8 + $0x70] sm:$0xff] %v278_v21 }
  0xee   :  { %392 = shalt.err (!%p389_p0)
}
  0xef   :  { %s393_s27 = scalar_lea.hbm %s837_s3, 2048 }
  0xf0   :  { %p394_p1 = scmp.ne.s32.totalorder %s837_s3, %s393_s27  ;;  %p397_p2 = scmp.lt.u32.totalorder %s393_s27, %s837_s3 }
  0xf2   :  { %p399_p3 = pnand %p397_p2, %p394_p1 }
  0xf4   :  { %402 = shalt.err (!%p399_p3)
}
  0xf5   :  { %300 = dma.vmem_to_hbm [thread:$0]  %s295_s23, 2048, %s837_s3, [#allocation4], %s411_s1, %s411_s1, %s412_s7  }
  0xf6   :  { %407 = dma.done.wait [#allocation4], 2048  }
  0xf7   :  { %408 = vsyncadd [#allocation4], 4294965248 }
  0xf8   :  { %304 = vsyncpa [#allocation3], 1 }
  0xf9   :  { %305 = vsyncpa [#allocation6], 1 }
  0xfa   :  { %306 = vsyncpa [#allocation4], 1 }

</bundles_post_ra>
